<compile_context>
chip_gen: v7x
topology: tpu7x:2x2x1
jax: 0.10.0
libtpu: 0.0.40
codegen_flags: <defaults>
</compile_context>

<pallas_src>
import functools

import jax
import jax.numpy as jnp
from jax.experimental import pallas as pl
from jax.experimental.pallas import tpu as pltpu

LANE = 128            # vreg lane width: pad feature dims to multiples of this.
SUBLANE = 8
TILE_M_DEFAULT = 256  # node-row tile (fits double-buffered bf16 A slabs on v5e/v6e/v7x).


def _round_up(a, b):
    return ((a + b - 1) // b) * b


def _pad2(w, rows, cols):
    """Zero-pad a 2-D array up to (rows, cols)."""
    return jnp.pad(w, ((0, rows - w.shape[0]), (0, cols - w.shape[1])))


# --------------------------------------------------------------------------- #
# Pallas kernel: one row-tile of the fused TGCN cell.
# --------------------------------------------------------------------------- #
def _tgcn_kernel(a_ref, x_ref, h_ref, wzrh_ref, bzrh_ref, wzr2_ref, wh2_ref,
                 hnew_ref, *, p):
    """
    a_ref    : (TM, Npad)  bf16  row slab of A_hat
    x_ref    : (Npad, Fin) bf16  full node features (resident across the grid)
    h_ref    : (TM, P)     bf16  row slab of the hidden state (P = padded out_ch)
    wzrh_ref : (Fin, 3P)   bf16  [wcz@wz1 | wcr@wr1 | wch@wh1]   (GCN folded into gates)
    bzrh_ref : (1, 3P)     f32   folded gate biases
    wzr2_ref : (P, 2P)     bf16  [wz2 | wr2]
    wh2_ref  : (P, P)      bf16
    hnew_ref : (TM, P)     f32   new hidden state (row slab)
    """
    # Graph propagation of the raw features: A_hat @ X  (bf16 MXU, f32 accumulate).
    ax = jnp.dot(a_ref[...], x_ref[...], preferred_element_type=jnp.float32)

    # All three gate "conv" contributions in a single wide MXU push: (TM, 3P).
    g = jnp.dot(ax.astype(jnp.bfloat16), wzrh_ref[...],
                preferred_element_type=jnp.float32) + bzrh_ref[...]

    # z/r hidden-state contributions in one push: (TM, 2P).
    hzr = jnp.dot(h_ref[...], wzr2_ref[...], preferred_element_type=jnp.float32)

    # Gate nonlinearities in f32 (EUP). Slices are lane-aligned (multiples of 128).
    z = jax.nn.sigmoid(g[:, :p] + hzr[:, :p])
    r = jax.nn.sigmoid(g[:, p:2 * p] + hzr[:, p:2 * p])

    h_f32 = h_ref[...].astype(jnp.float32)
    hr = (h_f32 * r).astype(jnp.bfloat16)
    h_tilde = jnp.tanh(
        g[:, 2 * p:] + jnp.dot(hr, wh2_ref[...], preferred_element_type=jnp.float32))

    hnew_ref[...] = (z * h_f32 + (1.0 - z) * h_tilde).astype(hnew_ref.dtype)


# --------------------------------------------------------------------------- #
# Graph / parameter preparation (done once, outside the per-step call).
# --------------------------------------------------------------------------- #
def build_normalized_adjacency(edge_index, num_nodes):
    """Dense GCN-normalized adjacency:  D^{-1/2} (A + I) D^{-1/2}."""
    src = edge_index[0]
    dst = edge_index[1]
    a = jnp.zeros((num_nodes, num_nodes), jnp.float32)
    a = a.at[dst, src].add(1.0)                      # aggregate at dst from src
    a = a + jnp.eye(num_nodes, dtype=jnp.float32)    # self loops
    deg = jnp.sum(a, axis=1)
    d_inv_sqrt = jnp.where(deg > 0, 1.0 / jnp.sqrt(deg), 0.0)
    return d_inv_sqrt[:, None] * a * d_inv_sqrt[None, :]


def init_params(key, in_channels, out_channels):
    """Deterministic synthetic parameters mirroring TGCN + Linear(out_channels, 1)."""
    ks = jax.random.split(key, 16)
    f32 = jnp.float32

    def w(k, shape, scale=0.1):
        return scale * jax.random.normal(k, shape, f32)

    p = {}
    p["wcz"] = w(ks[0], (in_channels, out_channels))
    p["wcr"] = w(ks[1], (in_channels, out_channels))
    p["wch"] = w(ks[2], (in_channels, out_channels))
    p["bcz"] = w(ks[3], (1, out_channels))
    p["bcr"] = w(ks[4], (1, out_channels))
    p["bch"] = w(ks[5], (1, out_channels))
    # Gate Linear(2*out, out): conv-half (w*1) and hidden-half (w*2).
    p["wz1"] = w(ks[6], (out_channels, out_channels))
    p["wz2"] = w(ks[7], (out_channels, out_channels))
    p["wr1"] = w(ks[8], (out_channels, out_channels))
    p["wr2"] = w(ks[9], (out_channels, out_channels))
    p["wh1"] = w(ks[10], (out_channels, out_channels))
    p["wh2"] = w(ks[11], (out_channels, out_channels))
    p["bz"] = w(ks[12], (1, out_channels))
    p["br"] = w(ks[13], (1, out_channels))
    p["bh"] = w(ks[14], (1, out_channels))
    kw, kb = jax.random.split(ks[15])
    p["wout"] = w(kw, (out_channels, 1))
    p["bout"] = w(kb, (1, 1))
    return p


def fold_params(params):
    """Fold GCNConv weights into the gate linears, concatenate, lane-pad, cast bf16.

    z = sigmoid(ax @ (wcz@wz1) + (bcz@wz1 + bz) + h @ wz2)   (and similarly r, h~),
    so only the folded products are needed in the kernel. Pad columns are zero, which
    makes the padded lanes of h_new provably zero (z_pad=0.5, h_pad=0, h~_pad=0).
    """
    out_ch = params["wz1"].shape[0]
    fin = params["wcz"].shape[0]
    p = _round_up(out_ch, LANE)

    wz_eff = params["wcz"] @ params["wz1"]
    wr_eff = params["wcr"] @ params["wr1"]
    wh_eff = params["wch"] @ params["wh1"]
    bz_eff = params["bcz"] @ params["wz1"] + params["bz"]
    br_eff = params["bcr"] @ params["wr1"] + params["br"]
    bh_eff = params["bch"] @ params["wh1"] + params["bh"]

    w_zrh = jnp.concatenate(
        [_pad2(wz_eff, fin, p), _pad2(wr_eff, fin, p), _pad2(wh_eff, fin, p)], axis=1)
    b_zrh = jnp.concatenate(
        [_pad2(bz_eff, 1, p), _pad2(br_eff, 1, p), _pad2(bh_eff, 1, p)], axis=1)
    w_zr2 = jnp.concatenate(
        [_pad2(params["wz2"], p, p), _pad2(params["wr2"], p, p)], axis=1)
    wh2 = _pad2(params["wh2"], p, p)

    return {
        "w_zrh": w_zrh.astype(jnp.bfloat16),   # (Fin, 3P)
        "b_zrh": b_zrh.astype(jnp.float32),    # (1,   3P)  biases stay f32
        "w_zr2": w_zr2.astype(jnp.bfloat16),   # (P,   2P)
        "wh2": wh2.astype(jnp.bfloat16),       # (P,   P)
        "wout": params["wout"],                # head stays f32 (computed in wrapper)
        "bout": params["bout"],
    }


# --------------------------------------------------------------------------- #
# Per-timestep forward.
# --------------------------------------------------------------------------- #
@jax.jit
def tgcn_step(a_hat, x, h, folded):
    """One recurrent step. Returns (out [N,1], h_new [N,out_channels])."""
    n, fin = x.shape
    out_ch = h.shape[1]
    p = folded["wh2"].shape[0]                       # padded out_channels (mult of 128)

    tile_m = TILE_M_DEFAULT if n >= TILE_M_DEFAULT else _round_up(n, SUBLANE)
    n_pad = _round_up(n, tile_m)

    # Pad node dimension to a tile multiple and cast operands to bf16.
    a_p = _pad2(a_hat, n_pad, n_pad).astype(jnp.bfloat16)
    x_p = _pad2(x, n_pad, fin).astype(jnp.bfloat16)
    h_p = _pad2(h, n_pad, p).astype(jnp.bfloat16)

    grid = (n_pad // tile_m,)
    grid_spec = pltpu.PrefetchScalarGridSpec(
        num_scalar_prefetch=0,
        grid=grid,
        in_specs=[
            pl.BlockSpec((tile_m, n_pad), lambda i: (i, 0)),   # A_hat row slab (streamed)
            pl.BlockSpec((n_pad, fin), lambda i: (0, 0)),      # X (resident)
            pl.BlockSpec((tile_m, p), lambda i: (i, 0)),       # H row slab
            pl.BlockSpec((fin, 3 * p), lambda i: (0, 0)),      # fused gate weights
            pl.BlockSpec((1, 3 * p), lambda i: (0, 0)),        # fused gate biases
            pl.BlockSpec((p, 2 * p), lambda i: (0, 0)),        # [wz2 | wr2]
            pl.BlockSpec((p, p), lambda i: (0, 0)),            # wh2
        ],
        out_specs=pl.BlockSpec((tile_m, p), lambda i: (i, 0)),  # h_new row slab
    )

    # Advisory cost estimate (A_hat stream dominates bytes).
    flops = (2 * n_pad * n_pad * fin            # A_hat @ X
             + 2 * n_pad * fin * 3 * p          # ax @ W_zrh
             + 2 * n_pad * p * 2 * p            # h  @ [wz2|wr2]
             + 2 * n_pad * p * p                # (h*r) @ wh2
             + 12 * n_pad * p)                  # gate elementwise
    bytes_accessed = (n_pad * n_pad * 2 + n_pad * fin * 2 + n_pad * p * 2
                      + (fin * 3 * p + p * 2 * p + p * p) * 2 + 3 * p * 4
                      + n_pad * p * 4)

    # NOTE: for very large N on v6e raise vmem_limit_bytes and/or tile_m; defaults
    # here are sized to fit the 32 MiB default scoped VMEM on every generation.
    h_new_pad = pl.pallas_call(
        functools.partial(_tgcn_kernel, p=p),
        grid_spec=grid_spec,
        out_shape=jax.ShapeDtypeStruct((n_pad, p), jnp.float32),
        compiler_params=pltpu.CompilerParams(
            dimension_semantics=("parallel",)),
        cost_estimate=pl.CostEstimate(flops=flops,
                                      transcendentals=3 * n_pad * p,
                                      bytes_accessed=bytes_accessed),
    )(a_p, x_p, h_p, folded["w_zrh"], folded["b_zrh"], folded["w_zr2"], folded["wh2"])

    h_new = h_new_pad[:n, :out_ch]
    # Final Linear(out_channels -> 1) + sigmoid head: kept in XLA on purpose — a
    # 1-column MXU matmul + (N,1) masked store would waste the systolic array.
    out = jax.nn.sigmoid(h_new @ folded["wout"] + folded["bout"])
    return out, h_new


# --------------------------------------------------------------------------- #
# Pure-JAX f32 reference (mirrors the PyTorch TGCN math) for sanity checking.
# --------------------------------------------------------------------------- #
def reference_forward(a_hat, x, h, params):
    ax = a_hat @ x
    cz = ax @ params["wcz"] + params["bcz"]
    cr = ax @ params["wcr"] + params["bcr"]
    ch = ax @ params["wch"] + params["bch"]
    z = jax.nn.sigmoid(cz @ params["wz1"] + h @ params["wz2"] + params["bz"])
    r = jax.nn.sigmoid(cr @ params["wr1"] + h @ params["wr2"] + params["br"])
    h_tilde = jnp.tanh(ch @ params["wh1"] + (h * r) @ params["wh2"] + params["bh"])
    h_new = z * h + (1.0 - z) * h_tilde
    out = jax.nn.sigmoid(h_new @ params["wout"] + params["bout"])
    return out, h_new


if __name__ == "__main__":
    num_nodes = 8
    in_channels = 4
    out_channels = 32
    num_edges = 16

    key = jax.random.PRNGKey(0)
    kx, ke, kh, kp = jax.random.split(key, 4)

    x = jax.random.normal(kx, (num_nodes, in_channels), jnp.float32)
    edge_index = jax.random.randint(ke, (2, num_edges), 0, num_nodes, jnp.int32)
    h0 = jnp.zeros((num_nodes, out_channels), jnp.float32)   # TGCN initial state

    params = init_params(kp, in_channels, out_channels)

    # Static graph + static weights: precompute once, outside the per-step call.
    a_hat = build_normalized_adjacency(edge_index, num_nodes)
    folded = fold_params(params)

    # Step 1 (h = 0) and step 2 (nonzero recurrent h) through the Pallas kernel.
    out1, h1 = tgcn_step(a_hat, x, h0, folded)
    out2, h2 = tgcn_step(a_hat, x, h1, folded)
    jax.block_until_ready((out1, h1, out2, h2))

    # f32 reference.
    ref_out1, ref_h1 = reference_forward(a_hat, x, h0, params)
    ref_out2, ref_h2 = reference_forward(a_hat, x, ref_h1, params)

    assert out1.shape == (num_nodes, 1) and h1.shape == (num_nodes, out_channels)
    # bf16 operands (f32 accumulation) + offline weight folding -> loosened tolerance.
    assert jnp.allclose(out1, ref_out1, atol=2e-2, rtol=2e-2)
    assert jnp.allclose(h1, ref_h1, atol=2e-2, rtol=2e-2)
    assert jnp.allclose(out2, ref_out2, atol=2e-2, rtol=2e-2)
    assert jnp.allclose(h2, ref_h2, atol=2e-2, rtol=2e-2)

    print("KERNEL_OK")
</pallas_src>

<mosaic_0001>
module attributes {stable_mosaic.version = 11 : i64} {
  func.func @_tgcn_kernel(%arg0: i32, %arg1: memref<8x8xbf16, #tpu.memory_space<vmem>>, %arg2: memref<8x4xbf16, #tpu.memory_space<vmem>>, %arg3: memref<8x128xbf16, #tpu.memory_space<vmem>>, %arg4: memref<4x384xbf16, #tpu.memory_space<vmem>>, %arg5: memref<1x384xf32, #tpu.memory_space<vmem>>, %arg6: memref<128x256xbf16, #tpu.memory_space<vmem>>, %arg7: memref<128x128xbf16, #tpu.memory_space<vmem>>, %arg8: memref<8x128xf32, #tpu.memory_space<vmem>>) attributes {dimension_semantics = [#tpu.dimension_semantics<parallel>], iteration_bounds = array<i64: 1>, scalar_prefetch = 0 : i64, scratch_operands = 0 : i64, tpu.core_type = #tpu.core_type<tc>, window_params = [{transform_indices = @transform_0, window_bounds = array<i64: 8, 8>}, {pipeline_mode = #tpu.pipeline_mode<synchronous>, transform_indices = @transform_1, window_bounds = array<i64: 8, 4>}, {transform_indices = @transform_2, window_bounds = array<i64: 8, 128>}, {pipeline_mode = #tpu.pipeline_mode<synchronous>, transform_indices = @transform_3, window_bounds = array<i64: 4, 384>}, {pipeline_mode = #tpu.pipeline_mode<synchronous>, transform_indices = @transform_4, window_bounds = array<i64: 1, 384>}, {pipeline_mode = #tpu.pipeline_mode<synchronous>, transform_indices = @transform_5, window_bounds = array<i64: 128, 256>}, {pipeline_mode = #tpu.pipeline_mode<synchronous>, transform_indices = @transform_6, window_bounds = array<i64: 128, 128>}, {transform_indices = @transform_7, window_bounds = array<i64: 8, 128>}]} {
    %c0 = arith.constant 0 : index
    %c0_0 = arith.constant 0 : index
    %0 = vector.load %arg1[%c0, %c0_0] : memref<8x8xbf16, #tpu.memory_space<vmem>>, vector<8x8xbf16>
    %c0_1 = arith.constant 0 : index
    %c0_2 = arith.constant 0 : index
    %1 = vector.load %arg2[%c0_1, %c0_2] : memref<8x4xbf16, #tpu.memory_space<vmem>>, vector<8x4xbf16>
    %cst = arith.constant dense<0.000000e+00> : vector<8x4xf32>
    %2 = tpu.matmul %0, %1, %cst {dimension_numbers = #tpu.dot_dimension_numbers<[1], [0], [0], [1], [0, 0, 1, 1], [], []>} : vector<8x8xbf16>, vector<8x4xbf16>, vector<8x4xf32> -> vector<8x4xf32>
    %3 = arith.truncf %2 : vector<8x4xf32> to vector<8x4xbf16>
    %c0_3 = arith.constant 0 : index
    %c0_4 = arith.constant 0 : index
    %4 = vector.load %arg4[%c0_3, %c0_4] : memref<4x384xbf16, #tpu.memory_space<vmem>>, vector<4x384xbf16>
    %cst_5 = arith.constant dense<0.000000e+00> : vector<8x384xf32>
    %5 = tpu.matmul %3, %4, %cst_5 {dimension_numbers = #tpu.dot_dimension_numbers<[1], [0], [0], [1], [0, 0, 1, 1], [], []>} : vector<8x4xbf16>, vector<4x384xbf16>, vector<8x384xf32> -> vector<8x384xf32>
    %c0_6 = arith.constant 0 : index
    %c0_7 = arith.constant 0 : index
    %6 = vector.load %arg5[%c0_6, %c0_7] : memref<1x384xf32, #tpu.memory_space<vmem>>, vector<1x384xf32>
    %7 = vector.broadcast %6 : vector<1x384xf32> to vector<8x384xf32>
    %8 = arith.addf %5, %7 : vector<8x384xf32>
    %c0_8 = arith.constant 0 : index
    %c0_9 = arith.constant 0 : index
    %9 = vector.load %arg3[%c0_8, %c0_9] : memref<8x128xbf16, #tpu.memory_space<vmem>>, vector<8x128xbf16>
    %c0_10 = arith.constant 0 : index
    %c0_11 = arith.constant 0 : index
    %10 = vector.load %arg6[%c0_10, %c0_11] : memref<128x256xbf16, #tpu.memory_space<vmem>>, vector<128x256xbf16>
    %cst_12 = arith.constant dense<0.000000e+00> : vector<8x256xf32>
    %11 = tpu.matmul %9, %10, %cst_12 {dimension_numbers = #tpu.dot_dimension_numbers<[1], [0], [0], [1], [0, 0, 1, 1], [], []>} : vector<8x128xbf16>, vector<128x256xbf16>, vector<8x256xf32> -> vector<8x256xf32>
    %12 = vector.extract_strided_slice %8 {offsets = [0, 0], sizes = [8, 128], strides = [1, 1]} : vector<8x384xf32> to vector<8x128xf32>
    %13 = vector.extract_strided_slice %11 {offsets = [0, 0], sizes = [8, 128], strides = [1, 1]} : vector<8x256xf32> to vector<8x128xf32>
    %14 = arith.addf %12, %13 : vector<8x128xf32>
    %15 = arith.negf %14 : vector<8x128xf32>
    %16 = math.exp %15 : vector<8x128xf32>
    %cst_13 = arith.constant 1.000000e+00 : f32
    %17 = vector.broadcast %cst_13 : f32 to vector<8x128xf32>
    %18 = arith.addf %17, %16 : vector<8x128xf32>
    %19 = arith.divf %17, %18 : vector<8x128xf32>
    %20 = vector.extract_strided_slice %8 {offsets = [0, 128], sizes = [8, 128], strides = [1, 1]} : vector<8x384xf32> to vector<8x128xf32>
    %21 = vector.extract_strided_slice %11 {offsets = [0, 128], sizes = [8, 128], strides = [1, 1]} : vector<8x256xf32> to vector<8x128xf32>
    %22 = arith.addf %20, %21 : vector<8x128xf32>
    %23 = arith.negf %22 : vector<8x128xf32>
    %24 = math.exp %23 : vector<8x128xf32>
    %cst_14 = arith.constant 1.000000e+00 : f32
    %25 = vector.broadcast %cst_14 : f32 to vector<8x128xf32>
    %26 = arith.addf %25, %24 : vector<8x128xf32>
    %27 = arith.divf %25, %26 : vector<8x128xf32>
    %c0_15 = arith.constant 0 : index
    %c0_16 = arith.constant 0 : index
    %28 = vector.load %arg3[%c0_15, %c0_16] : memref<8x128xbf16, #tpu.memory_space<vmem>>, vector<8x128xbf16>
    %29 = arith.extf %28 : vector<8x128xbf16> to vector<8x128xf32>
    %30 = arith.mulf %29, %27 : vector<8x128xf32>
    %31 = arith.truncf %30 : vector<8x128xf32> to vector<8x128xbf16>
    %32 = vector.extract_strided_slice %8 {offsets = [0, 256], sizes = [8, 128], strides = [1, 1]} : vector<8x384xf32> to vector<8x128xf32>
    %c0_17 = arith.constant 0 : index
    %c0_18 = arith.constant 0 : index
    %33 = vector.load %arg7[%c0_17, %c0_18] : memref<128x128xbf16, #tpu.memory_space<vmem>>, vector<128x128xbf16>
    %cst_19 = arith.constant dense<0.000000e+00> : vector<8x128xf32>
    %34 = tpu.matmul %31, %33, %cst_19 {dimension_numbers = #tpu.dot_dimension_numbers<[1], [0], [0], [1], [0, 0, 1, 1], [], []>} : vector<8x128xbf16>, vector<128x128xbf16>, vector<8x128xf32> -> vector<8x128xf32>
    %35 = arith.addf %32, %34 : vector<8x128xf32>
    %36 = math.tanh %35 : vector<8x128xf32>
    %37 = arith.mulf %19, %29 : vector<8x128xf32>
    %cst_20 = arith.constant 1.000000e+00 : f32
    %38 = vector.broadcast %cst_20 : f32 to vector<8x128xf32>
    %39 = arith.subf %38, %19 : vector<8x128xf32>
    %40 = arith.mulf %39, %36 : vector<8x128xf32>
    %41 = arith.addf %37, %40 : vector<8x128xf32>
    %c0_21 = arith.constant 0 : index
    %c0_22 = arith.constant 0 : index
    %42 = vector.load %arg8[%c0_21, %c0_22] : memref<8x128xf32, #tpu.memory_space<vmem>>, vector<8x128xf32>
    tpu.vector_store %arg8[%c0_21, %c0_22], %41 {strides = array<i32>} : memref<8x128xf32, #tpu.memory_space<vmem>>, vector<8x128xf32>,
    return
  }
  func.func @transform_0(%arg0: i32) -> (i32, i32) {
    %c0_i32 = arith.constant 0 : i32
    %c0_i32_0 = arith.constant 0 : i32
    return %arg0, %c0_i32 : i32, i32
  }
  func.func @transform_1(%arg0: i32) -> (i32, i32) {
    %c0_i32 = arith.constant 0 : i32
    %c0_i32_0 = arith.constant 0 : i32
    %c0_i32_1 = arith.constant 0 : i32
    return %c0_i32, %c0_i32_0 : i32, i32
  }
  func.func @transform_2(%arg0: i32) -> (i32, i32) {
    %c0_i32 = arith.constant 0 : i32
    %c0_i32_0 = arith.constant 0 : i32
    return %arg0, %c0_i32 : i32, i32
  }
  func.func @transform_3(%arg0: i32) -> (i32, i32) {
    %c0_i32 = arith.constant 0 : i32
    %c0_i32_0 = arith.constant 0 : i32
    %c0_i32_1 = arith.constant 0 : i32
    return %c0_i32, %c0_i32_0 : i32, i32
  }
  func.func @transform_4(%arg0: i32) -> (i32, i32) {
    %c0_i32 = arith.constant 0 : i32
    %c0_i32_0 = arith.constant 0 : i32
    %c0_i32_1 = arith.constant 0 : i32
    return %c0_i32, %c0_i32_0 : i32, i32
  }
  func.func @transform_5(%arg0: i32) -> (i32, i32) {
    %c0_i32 = arith.constant 0 : i32
    %c0_i32_0 = arith.constant 0 : i32
    %c0_i32_1 = arith.constant 0 : i32
    return %c0_i32, %c0_i32_0 : i32, i32
  }
  func.func @transform_6(%arg0: i32) -> (i32, i32) {
    %c0_i32 = arith.constant 0 : i32
    %c0_i32_0 = arith.constant 0 : i32
    %c0_i32_1 = arith.constant 0 : i32
    return %c0_i32, %c0_i32_0 : i32, i32
  }
  func.func @transform_7(%arg0: i32) -> (i32, i32) {
    %c0_i32 = arith.constant 0 : i32
    %c0_i32_0 = arith.constant 0 : i32
    return %arg0, %c0_i32 : i32, i32
  }
}

</mosaic_0001>

<bundles_post_ra>
// kernel: tgcn_step.1
= control target key start
LH: loop header
LB: loop body
LE: loop exit
PB: predicated region body
PF: predicated region fallthrough
CT: control target
= control target key end

     0   :  { %12 = vsyncpa [#allocation3], 0  ;;  %s812_s0 = inlined_call_operand.vmem [shape: bf16[8,8], index: 0, kind: input, shape index: {}]   ;;  %s813_s1 = inlined_call_operand.vmem [shape: bf16[8,4], index: 1, kind: input, shape index: {}]   ;;  %s814_s2 = inlined_call_operand.vmem [shape: bf16[8,128], index: 2, kind: input, shape index: {}]   ;;  %s815_s3 = inlined_call_operand.vmem [shape: bf16[4,384], index: 3, kind: input, shape index: {}]   ;;  %s816_s4 = inlined_call_operand.vmem [shape: f32[1,384], index: 4, kind: input, shape index: {}]   ;;  %s817_s5 = inlined_call_operand.hbm [shape: bf16[128,256], index: 5, kind: input, shape index: {}]   ;;  %s818_s6 = inlined_call_operand.hbm [shape: bf16[128,128], index: 6, kind: input, shape index: {}]   ;;  %s819_s7 = inlined_call_operand.vmem [shape: f32[8,128], index: 7, kind: output, shape index: {}]  }
   0x1   :  { %13 = vsyncpa [#allocation5], 0  ;;  %s695_s24 = smov [#allocation2]   ;;  %s647_s28 = scalar_lea.hbm %s817_s5, 2048 }
   0x2   :  { %s29_s25 = sshll.u32 %s695_s24, 4  ;;  %p648_p0 = scmp.ne.s32.totalorder %s817_s5, %s647_s28  ;;  %s30_s25 = int_to_ptr.vmem [resolvable:$true] %s29_s25 }
   0x3   :  { %p651_p1 = scmp.lt.u32.totalorder %s647_s28, %s817_s5 }
   0x5   :  { %p653_p2 = pnand %p651_p1, %p648_p0 }
   0x7   :  { %656 = shalt.err (!%p653_p2)
}
   0x8   :  { %s657_s10 = scalar_lea.vmem %s30_s25, 2048  ;;  %p662_p4 = scmp.lt.s32.totalorder %s30_s25, %s30_s25 }
   0x9   :  { %p658_p3 = scmp.ne.s32.totalorder %s30_s25, %s657_s10  ;;  %p663_p5 = scmp.lt.s32.totalorder %s657_s10, %s657_s10 }
   0xb   :  { %p664_p6 = por %p663_p5, %p662_p4 }
   0xd   :  { %p665_p7 = pnand %p664_p6, %p658_p3 }
   0xf   :  { %668 = shalt.err (!%p665_p7)
}
  0x10   :  { %s696_s11 = smov 128   ;;  %s697_s12 = smov 8  }
  0x11   :  { %35 = dma.hbm_to_vmem [thread:$0]  %s817_s5, 2048, %s30_s25, [#allocation3], %s696_s11, %s696_s11, %s697_s12  }
  0x12   :  { %s698_s15 = smov [#allocation4]   ;;  %s669_s19 = scalar_lea.hbm %s818_s6, 1024 }
  0x13   :  { %s41_s16 = sshll.u32 %s698_s15, 4  ;;  %p670_p8 = scmp.ne.s32.totalorder %s818_s6, %s669_s19  ;;  %s42_s16 = int_to_ptr.vmem [resolvable:$true] %s41_s16 }
  0x14   :  { %p673_p9 = scmp.lt.u32.totalorder %s669_s19, %s818_s6 }
  0x16   :  { %p675_p10 = pnand %p673_p9, %p670_p8 }
  0x18   :  { %678 = shalt.err (!%p675_p10)
}
  0x19   :  { %s679_s24 = scalar_lea.vmem %s42_s16, 1024  ;;  %p684_p12 = scmp.lt.s32.totalorder %s42_s16, %s42_s16 }
  0x1a   :  { %p680_p11 = scmp.ne.s32.totalorder %s42_s16, %s679_s24  ;;  %p685_p13 = scmp.lt.s32.totalorder %s679_s24, %s679_s24 }
  0x1c   :  { %p686_p0 = por %p685_p13, %p684_p12 }
  0x1e   :  { %p687_p1 = pnand %p686_p0, %p680_p11 }
  0x20   :  { %690 = shalt.err (!%p687_p1)
}
  0x21   :  { %s699_s5 = smov 64   ;;  %s700_s25 = smov 4  }
  0x22   :  { %47 = dma.hbm_to_vmem [thread:$0]  %s818_s6, 1024, %s42_s16, [#allocation5], %s699_s5, %s699_s5, %s700_s25  }
  0x23   :  { %691 = dma.done.wait [#allocation3], 2048  }
  0x24   :  { %692 = vsyncadd [#allocation3], 4294965248 }
  0x25   :  { %693 = dma.done.wait [#allocation5], 1024  }
  0x26   :  { %694 = vsyncadd [#allocation5], 4294966272  ;;  %v701_v0 = vmov 0.0   ;;  %vm702_vm0 = vmmov 0   ;;  %v109_v1 = vlaneseq  ;;  %v703_v2 = vmov 1983009808  }
  0x27   :  { %551 = vmatprep.subr.bf16.mxu0 %v701_v0  ;;  %553 = vmatprep.mubr.msk.bf16.mxu0 %vm702_vm0, %v701_v0  ;;  %v127_v3 = vunpack.c.l.s4 %v703_v2  ;;  %vm61_vm1 = vcmask 1043456   ;;  %vm145_vm2 = vcmask 1041408   ;;  %v56_v7 = vld [vmem:[%s813_s1] sm:$0xf]  ;;  %vm57_vm3 = vcmask 64512   ;;  %v630_v41 = vld [vmem:[#allocation4 + $0x8] sm:$0xff]  }
  0x28   :  { %v772_v4 = vshrl.u32 %v109_v1, 7  ;;  %v55_v8 = vld [vmem:[%s812_s0] sm:$0xf]  ;;  %v63_v10 = vsel %vm61_vm1, %v56_v7, 0  ;;  %v607_v17 = vld [vmem:[#allocation2 + $0x4] ss:$8 sps:$4 sm:$0xff]  }
  0x29   :  { %v128_v5 = vunpack.c.0.s8 %v127_v3  ;;  %v106_v9 = vld [vmem:[%s815_s3] sm:$0x3f]  ;;  %552 = vmatpush3.bf16.msra.mxu0 %v63_v10  ;;  %v704_v18 = vmov 0   ;;  %vm141_vm4 = vcmask 31744   ;;  %v610_v23 = vld [vmem:[#allocation2 + $0x14] ss:$8 sps:$4 sm:$0xff]  }
  0x2a   :  { %557 = vmatprep.subr.bf16.mxu0 %v701_v0  ;;  %v125_v14 = vcombine.high %v106_v9, %v106_v9  ;;  %187 = vmatprep.mubr.bf16.mxu1 %v704_v18  ;;  %v605_v20 = vld [vmem:[#allocation2] ss:$8 sps:$4 sm:$0xff]   ;;  %v608_v26 = vld [vmem:[#allocation2 + $0x10] ss:$8 sps:$4 sm:$0xff]   ;;  %v613_v27 = vld [vmem:[#allocation2 + $0x24] ss:$8 sps:$4 sm:$0xff]  }
  0x2b   :  { %v131_v6 = vsub.s32 %v128_v5, %v772_v4  ;;  %v611_v28 = vld [vmem:[#allocation2 + $0x20] ss:$8 sps:$4 sm:$0xff]   ;;  %v616_v29 = vld [vmem:[#allocation2 + $0x34] ss:$8 sps:$4 sm:$0xff]   ;;  %v614_v30 = vld [vmem:[#allocation2 + $0x30] ss:$8 sps:$4 sm:$0xff]  }
  0x2c   :  { %554 = vmatmul.mubr.msk.bf16.vlgmr.msra.gmra.mrb[0].mxu0 %vm57_vm3, %v55_v8  ;;  %v619_v31 = vld [vmem:[#allocation2 + $0x44] ss:$8 sps:$4 sm:$0xff]   ;;  %v617_v32 = vld [vmem:[#allocation2 + $0x40] ss:$8 sps:$4 sm:$0xff]   ;;  %v622_v33 = vld [vmem:[#allocation2 + $0x54] ss:$8 sps:$4 sm:$0xff]  }
  0x2d   :  { %v132_v11 = vrot.slane %v106_v9, %v131_v6  ;;  %559 = vmatprep.mubr.msk.bf16.mxu0 %vm702_vm0, %v701_v0  ;;  %v139_v15 = vrot.slane %v125_v14, %v131_v6  ;;  %v620_v34 = vld [vmem:[#allocation2 + $0x50] ss:$8 sps:$4 sm:$0xff]   ;;  %v625_v35 = vld [vmem:[#allocation2 + $0x64] ss:$8 sps:$4 sm:$0xff]   ;;  %v623_v36 = vld [vmem:[#allocation2 + $0x60] ss:$8 sps:$4 sm:$0xff]  }
  0x2e   :  { %v628_v37 = vld [vmem:[#allocation2 + $0x74] ss:$8 sps:$4 sm:$0xff]   ;;  %v626_v38 = vld [vmem:[#allocation2 + $0x70] ss:$8 sps:$4 sm:$0xff]   ;;  %v236_v39 = vld [vmem:[%s814_s2] sm:$0xf] }
  0x2f   :  { %v140_v12 = vcombine.high %v132_v11, %v132_v11  ;;  %v147_v13 = vsel %vm145_vm2, %v132_v11, 0  ;;  %v153_v16 = vsel %vm145_vm2, %v139_v15, 0  ;;  %v629_v40 = vld [vmem:[#allocation4] sm:$0xff]   ;;  %v631_v42 = vld [vmem:[#allocation4 + $0x10] sm:$0xff]   ;;  %v632_v43 = vld [vmem:[#allocation4 + $0x18] sm:$0xff]   ;;  %v111_v48 = vsub.s32 0, %v772_v4 }
  0x30   :  { %558 = vmatpush3.bf16.msra.mxu0 %v153_v16  ;;  %v633_v44 = vld [vmem:[#allocation4 + $0x20] sm:$0xff]   ;;  %v634_v45 = vld [vmem:[#allocation4 + $0x28] sm:$0xff]   ;;  %v635_v46 = vld [vmem:[#allocation4 + $0x30] sm:$0xff]   ;;  %v115_v50 = vsub.s32 1, %v772_v4  ;;  %v388_v1 = vunpack.c.l.bf16 %v236_v39  ;;  %v119_v8 = vsub.s32 2, %v772_v4 }
  0x31   :  { %509 = vmatprep.subr.msk.bf16.mxu1 %vm145_vm2, %v140_v12  ;;  %563 = vmatprep.subr.bf16.mxu0 %v701_v0  ;;  %v636_v47 = vld [vmem:[#allocation4 + $0x38] sm:$0xff]   ;;  %v107_v49 = vld [vmem:[%s816_s4] sm:$0x7] }
  0x32   :  { %156 = vmatpush1.bf16.msra.mxu1 %v147_v13  ;;  %v112_v51 = vrot.slane %v107_v49, %v111_v48  ;;  %v116_v52 = vrot.slane %v107_v49, %v115_v50  ;;  %v120_v9 = vrot.slane %v107_v49, %v119_v8 }
  0x33   :  { %333 = vmatprep.subr.bf16.mxu1 %v607_v17 }
  0xff   :  { %v99_v19 = vpop.f32.mrb[0].mxu0 }
 0x100   :  { %v105_v21 = vpack.c.bf16 %v99_v19, %v99_v19  ;;  %v555_v22 = vpop.f32.mrb[1].mxu0 }
 0x101   :  { %v102_v24 = vpop.f32.mrb[2].mxu0 }
 0x102   :  { %v556_v25 = vpop.f32.mrb[3].mxu0  ;;  %510 = vmatmul.mubr.msk.bf16.vlgmr.msra.gmra.mrb[0].mxu1 %vm141_vm4, %v105_v21  ;;  %560 = vmatmul.mubr.msk.bf16.vlgmr.msra.gmra.mrb[4].mxu0 %vm141_vm4, %v105_v21 }
 0x103   :  { %334 = vmatpush1.bf16.msra.mxu1 %v605_v20  ;;  %365 = vmatprep.mubr.bf16.mxu1 %v704_v18 }
 0x104   :  { %335 = vmatprep.subr.bf16.mxu1 %v610_v23  ;;  %579 = vmatprep.mubr.msk.bf16.mxu0 %vm702_vm0, %v701_v0 }
 0x105   :  { %564 = vmatpush3.bf16.msra.mxu0 %v629_v40 }
 0x106   :  { %565 = vmatprep.subr.bf16.mxu0 %v701_v0 }
 0x107   :  { %336 = vmatpush1.bf16.msra.mxu1 %v608_v26 }
 0x108   :  { %337 = vmatprep.subr.bf16.mxu1 %v613_v27 }
 0x109   :  { %566 = vmatpush3.bf16.msra.mxu0 %v630_v41 }
 0x10a   :  { %567 = vmatprep.subr.bf16.mxu0 %v701_v0 }
 0x10b   :  { %338 = vmatpush1.bf16.msra.mxu1 %v611_v28 }
 0x10c   :  { %339 = vmatprep.subr.bf16.mxu1 %v616_v29 }
 0x10d   :  { %568 = vmatpush3.bf16.msra.mxu0 %v631_v42 }
 0x10e   :  { %569 = vmatprep.subr.bf16.mxu0 %v701_v0 }
 0x10f   :  { %340 = vmatpush1.bf16.msra.mxu1 %v614_v30 }
 0x110   :  { %341 = vmatprep.subr.bf16.mxu1 %v619_v31 }
 0x111   :  { %570 = vmatpush3.bf16.msra.mxu0 %v632_v43 }
 0x112   :  { %571 = vmatprep.subr.bf16.mxu0 %v701_v0 }
 0x113   :  { %342 = vmatpush1.bf16.msra.mxu1 %v617_v32 }
 0x114   :  { %343 = vmatprep.subr.bf16.mxu1 %v622_v33 }
 0x115   :  { %572 = vmatpush3.bf16.msra.mxu0 %v633_v44 }
 0x116   :  { %573 = vmatprep.subr.bf16.mxu0 %v701_v0 }
 0x117   :  { %344 = vmatpush1.bf16.msra.mxu1 %v620_v34 }
 0x118   :  { %345 = vmatprep.subr.bf16.mxu1 %v625_v35 }
 0x119   :  { %574 = vmatpush3.bf16.msra.mxu0 %v634_v45 }
 0x11a   :  { %575 = vmatprep.subr.bf16.mxu0 %v701_v0 }
 0x11b   :  { %346 = vmatpush1.bf16.msra.mxu1 %v623_v36 }
 0x11c   :  { %347 = vmatprep.subr.bf16.mxu1 %v628_v37 }
 0x11d   :  { %576 = vmatpush3.bf16.msra.mxu0 %v635_v46 }
 0x11e   :  { %577 = vmatprep.subr.bf16.mxu0 %v701_v0 }
 0x11f   :  { %348 = vmatpush1.bf16.msra.mxu1 %v626_v38 }
 0x121   :  { %578 = vmatpush3.bf16.msra.mxu0 %v636_v47 }
 0x122   :  { %366 = vmatmul.mubr.bf16.vlgmr.msra.gmra.mrb[0].mxu1 %v236_v39 }
 0x1f5   :  { %v367_v53 = vpop.f32.mrb[0].mxu1 }
 0x1f6   :  { %v583_v54 = vadd.f32 %v367_v53, %v112_v51  ;;  %v369_v55 = vpop.f32.mrb[1].mxu1 }
 0x1f7   :  { %v584_v56 = vadd.f32 %v369_v55, %v116_v52  ;;  %v371_v57 = vpop.f32.mrb[2].mxu1 }
 0x1f8   :  { %v528_v58 = vmul.f32 -1.442695, %v583_v54  ;;  %v372_v59 = vpop.f32.mrb[3].mxu1 }
 0x1f9   :  { %v529_v60 = vmul.f32 -1.442695, %v584_v56 }
 0x1fa   :  { %637 = vpow2.f32 %v528_v58 }
 0x1fb   :  { %639 = vpow2.f32 %v529_v60 }
 0x204   :  { %v638_v61 = vpop.eup %637 }
 0x205   :  { %v640_v62 = vpop.eup %639  ;;  %v378_v63 = vadd.f32 1.0, %v638_v61 }
 0x206   :  { %v385_v0 = vadd.f32 1.0, %v640_v62 }
 0x207   :  { %641 = vrcp.f32 %v378_v63 }
 0x208   :  { %643 = vrcp.f32 %v385_v0 }
 0x211   :  { %v642_v2 = vpop.eup %641 }
 0x212   :  { %v644_v3 = vpop.eup %643  ;;  %v497_v5 = vmul.f32 %v642_v2, %v388_v1  ;;  %v498_v15 = vsub.f32 1.0, %v642_v2 }
 0x213   :  { %v389_v6 = vmul.f32 %v644_v3, %v388_v1 }
 0x215   :  { %v390_v7 = vpack.c.bf16 %v389_v6, %v389_v6 }
 0x217   :  { %580 = vmatmul.mubr.bf16.vlgmr.msra.gmra.mrb[4].mxu0 %v390_v7 }
 0x2ea   :  { %v489_v10 = vpop.f32.mrb[4].mxu0 }
 0x2eb   :  { %v585_v11 = vadd.f32 %v489_v10, %v120_v9  ;;  %v581_v12 = vpop.f32.mrb[5].mxu0 }
 0x2ec   :  { %v492_v13 = vpop.f32.mrb[6].mxu0 }
 0x2ed   :  { %645 = vtanh.f32 %v585_v11  ;;  %v582_v14 = vpop.f32.mrb[7].mxu0 }
 0x2f7   :  { %v646_v16 = vpop.eup %645 }
 0x2f8   :  { %v499_v17 = vmul.f32 %v646_v16, %v498_v15 }
 0x2fa   :  { %v500_v18 = vadd.f32 %v499_v17, %v497_v5 }
 0x2fc   :  { %501 = vst [vmem:[%s819_s7] sm:$0xff] %v500_v18 }
 0x2fd   :  { %506 = vsyncpa [#allocation3], 1 }
 0x2fe   :  { %507 = vsyncpa [#allocation5], 1 }

</bundles_post_ra>
